<compile_context>
chip_gen: v6e
topology: v6e:2x2x1
jax: 0.10.0
libtpu: 0.0.40
codegen_flags: <defaults>
</compile_context>

<pallas_src>
import functools

import jax
import jax.numpy as jnp
from jax.experimental import pallas as pl
from jax.experimental.pallas import tpu as pltpu


def _round_up(x: int, m: int) -> int:
    return (x + m - 1) // m * m


# ---------------------------------------------------------------------------
# Pallas kernel: h = relu(nf @ Wn + ng @ Wg + b)
# ---------------------------------------------------------------------------
def encoder_kernel(nf_ref, ng_ref, wn_ref, wg_ref, b_ref, o_ref):
    # nf_ref, ng_ref : (TM, F)  bf16  node / aggregated-neighbor features
    # wn_ref, wg_ref : (F, TN)  bf16  split, pre-transposed, column-padded weight
    # b_ref          : (1, TN)  f32   column-padded bias
    # o_ref          : (TM, TN) f32   lane-dense output tile (TN % 128 == 0)
    acc = jnp.dot(nf_ref[...], wn_ref[...], preferred_element_type=jnp.float32)
    acc = acc + jnp.dot(ng_ref[...], wg_ref[...],
                        preferred_element_type=jnp.float32)
    acc = acc + b_ref[...]                              # f32 epilogue (v5e-safe)
    o_ref[...] = jnp.maximum(acc, 0.0).astype(o_ref.dtype)


# ---------------------------------------------------------------------------
# One-time parameter preparation (hoisted out of the per-call path).
# ---------------------------------------------------------------------------
def prepare_encoder_params(W, b):
    """W: (E, 2F) in nn.Linear layout, b: (E,).

    Returns (w_node, w_neigh, b_packed):
      w_node/w_neigh: (F, E_pad) bf16 halves of W.T (node cols / neighbor cols)
      b_packed:       (1, E_pad) f32
    with E_pad % 128 == 0 (lane-dense output columns).
    """
    E, K = W.shape
    F = K // 2
    E_pad = _round_up(E, 128)
    Wt = W.T                                             # (2F, E)
    w_node = jnp.zeros((F, E_pad), jnp.float32).at[:, :E].set(Wt[:F])
    w_neigh = jnp.zeros((F, E_pad), jnp.float32).at[:, :E].set(Wt[F:])
    b_packed = jnp.zeros((1, E_pad), jnp.float32).at[:, :E].set(b[None, :])
    return (w_node.astype(jnp.bfloat16), w_neigh.astype(jnp.bfloat16), b_packed)


def _pick_tm(b_pad: int, cap: int = 512) -> int:
    """Largest multiple of 8 <= cap dividing b_pad, preferring >= 2 grid steps
    so v7x's second TensorCore is not idle."""
    cands = [tm for tm in range(8, min(cap, b_pad) + 1, 8) if b_pad % tm == 0]
    if not cands:
        return b_pad
    multi = [tm for tm in cands if b_pad // tm >= 2]
    return max(multi) if multi else max(cands)


def _pick_tn(e_pad: int) -> int:
    # Keep the whole output width (and therefore the whole weight) resident in
    # VMEM for the normal GraphSAGE case; fall back to 512 (multiple of 256 so
    # the 256-wide MXU N dim stays full) for very large embed dims.
    if e_pad <= 2048:
        return e_pad
    for tn in (512, 256, 128):
        if e_pad % tn == 0:
            return tn
    return 128


def _vmem_bytes(tm: int, tn: int, f: int) -> int:
    act = 2 * 2 * tm * f * 2           # nf + ng, double-buffered, bf16
    out = 2 * tm * tn * 4              # output, double-buffered, f32
    wgt = 2 * f * tn * 2 + tn * 4      # resident split weights + bias
    return act + out + wgt


# ---------------------------------------------------------------------------
# Forward: gather + mean aggregate + padded bf16 cast (one XLA fusion) + kernel
# ---------------------------------------------------------------------------
@functools.partial(jax.jit, static_argnames=("embed_dim",))
def encoder_forward(feature_table, nodes, adj_sampled,
                    w_node, w_neigh, b_packed, embed_dim):
    """feature_table: (N, F) f32; nodes: (B,) i32; adj_sampled: (N, S) i32."""
    F, E_pad = w_node.shape

    # --- GraphSAGE front end (fuses with the bf16 cast + pad below) ---------
    node_feats = jnp.take(feature_table, nodes, axis=0)                # (B, F)
    neigh_idx = jnp.take(adj_sampled, nodes, axis=0)                   # (B, S)
    neigh_feats = jnp.take(feature_table, neigh_idx, axis=0).mean(axis=1)

    B = node_feats.shape[0]
    B_pad = _round_up(B, 8)
    TM = _pick_tm(B_pad)
    TN = _pick_tn(E_pad)

    # pad batch + cast to bf16 at the kernel boundary (single fusion writing
    # the bf16 padded buffers directly)
    nf = jnp.pad(node_feats.astype(jnp.bfloat16), ((0, B_pad - B), (0, 0)))
    ng = jnp.pad(neigh_feats.astype(jnp.bfloat16), ((0, B_pad - B), (0, 0)))

    nb = B_pad // TM
    nj = E_pad // TN
    if nj == 1:
        # 1-D grid over batch: weight/bias block index is constant -> resident
        grid = (nb,)
        in_specs = [
            pl.BlockSpec((TM, F), lambda i: (i, 0)),
            pl.BlockSpec((TM, F), lambda i: (i, 0)),
            pl.BlockSpec((F, TN), lambda i: (0, 0)),
            pl.BlockSpec((F, TN), lambda i: (0, 0)),
            pl.BlockSpec((1, TN), lambda i: (0, 0)),
        ]
        out_specs = pl.BlockSpec((TM, TN), lambda i: (i, 0))
        dim_sem = ("parallel",)
    else:
        grid = (nb, nj)
        in_specs = [
            pl.BlockSpec((TM, F), lambda i, j: (i, 0)),
            pl.BlockSpec((TM, F), lambda i, j: (i, 0)),
            pl.BlockSpec((F, TN), lambda i, j: (0, j)),
            pl.BlockSpec((F, TN), lambda i, j: (0, j)),
            pl.BlockSpec((1, TN), lambda i, j: (0, j)),
        ]
        out_specs = pl.BlockSpec((TM, TN), lambda i, j: (i, j))
        dim_sem = ("parallel", "parallel")

    est = _vmem_bytes(TM, TN, F)
    vmem_limit = None
    if est > 24 << 20:                       # above the smallest default scoped limit
        vmem_limit = min(2 * est, 56 << 20)  # stay under v7x's 64 MiB physical VMEM

    out = pl.pallas_call(
        encoder_kernel,
        out_shape=jax.ShapeDtypeStruct((B_pad, E_pad), jnp.float32),
        grid=grid,
        in_specs=in_specs,
        out_specs=out_specs,
        compiler_params=pltpu.CompilerParams(
            dimension_semantics=dim_sem,
            vmem_limit_bytes=vmem_limit),
    )(nf, ng, w_node, w_neigh, b_packed)

    # TODO(synk): at realistic sizes keep the padded (B_pad, E_pad) layout (and
    # optionally a bf16 output) flowing downstream to avoid this slice copy.
    return out[:B, :embed_dim]


if __name__ == "__main__":
    key = jax.random.PRNGKey(0)
    k_feat, k_w, k_b, k_adj, k_nodes = jax.random.split(key, 5)

    num_nodes = 64
    feat_dim = 32
    embed_dim = 16
    num_sample = 10
    batch = 8

    # feature_map: embedding table for all graph nodes
    feature_table = jax.random.normal(k_feat, (num_nodes, feat_dim),
                                      dtype=jnp.float32)

    # W_k = nn.Linear(2*feat_dim, embed_dim): weight (E, 2F), bias (E,)
    bound = 1.0 / jnp.sqrt(2.0 * feat_dim)
    W_k = jax.random.uniform(k_w, (embed_dim, 2 * feat_dim),
                             minval=-bound, maxval=bound, dtype=jnp.float32)
    b_k = jax.random.uniform(k_b, (embed_dim,),
                             minval=-bound, maxval=bound, dtype=jnp.float32)

    # adjacency list, pre-sampled to num_sample neighbors per node (deterministic)
    adj_sampled = jax.random.randint(k_adj, (num_nodes, num_sample),
                                     0, num_nodes, dtype=jnp.int32)

    # batch of nodes
    nodes = jax.random.randint(k_nodes, (batch,), 0, num_nodes, dtype=jnp.int32)

    # One-time parameter prep (split + transpose + pad + bf16), hoisted out of
    # the per-call path.
    w_node, w_neigh, b_packed = prepare_encoder_params(W_k, b_k)

    # --- forward ---
    h = encoder_forward(feature_table, nodes, adj_sampled,
                        w_node, w_neigh, b_packed, embed_dim)
    h = jax.block_until_ready(h)

    # reference check (plain JAX, f32); tolerance loosened for bf16 MXU inputs
    node_feats = jnp.take(feature_table, nodes, axis=0)
    neigh_feats = jnp.take(feature_table, adj_sampled[nodes], axis=0).mean(axis=1)
    ref = jnp.maximum(
        jnp.concatenate([node_feats, neigh_feats], axis=1) @ W_k.T + b_k, 0.0)
    assert h.shape == (batch, embed_dim)
    assert jnp.allclose(h, ref, atol=2e-2, rtol=2e-2), (
        float(jnp.max(jnp.abs(h - ref))))

    print("KERNEL_OK")
</pallas_src>

<mosaic_0001>
module attributes {stable_mosaic.version = 11 : i64} {
  func.func @encoder_kernel(%arg0: i32, %arg1: memref<8x32xbf16, #tpu.memory_space<vmem>>, %arg2: memref<8x32xbf16, #tpu.memory_space<vmem>>, %arg3: memref<32x128xbf16, #tpu.memory_space<vmem>>, %arg4: memref<32x128xbf16, #tpu.memory_space<vmem>>, %arg5: memref<1x128xf32, #tpu.memory_space<vmem>>, %arg6: memref<8x128xf32, #tpu.memory_space<vmem>>) attributes {dimension_semantics = [#tpu.dimension_semantics<parallel>], iteration_bounds = array<i64: 1>, scalar_prefetch = 0 : i64, scratch_operands = 0 : i64, tpu.core_type = #tpu.core_type<tc>, window_params = [{transform_indices = @transform_0, window_bounds = array<i64: 8, 32>}, {transform_indices = @transform_1, window_bounds = array<i64: 8, 32>}, {pipeline_mode = #tpu.pipeline_mode<synchronous>, transform_indices = @transform_2, window_bounds = array<i64: 32, 128>}, {pipeline_mode = #tpu.pipeline_mode<synchronous>, transform_indices = @transform_3, window_bounds = array<i64: 32, 128>}, {pipeline_mode = #tpu.pipeline_mode<synchronous>, transform_indices = @transform_4, window_bounds = array<i64: 1, 128>}, {transform_indices = @transform_5, window_bounds = array<i64: 8, 128>}]} {
    %c0 = arith.constant 0 : index
    %c0_0 = arith.constant 0 : index
    %0 = vector.load %arg1[%c0, %c0_0] : memref<8x32xbf16, #tpu.memory_space<vmem>>, vector<8x32xbf16>
    %c0_1 = arith.constant 0 : index
    %c0_2 = arith.constant 0 : index
    %1 = vector.load %arg3[%c0_1, %c0_2] : memref<32x128xbf16, #tpu.memory_space<vmem>>, vector<32x128xbf16>
    %cst = arith.constant dense<0.000000e+00> : vector<8x128xf32>
    %2 = tpu.matmul %0, %1, %cst {dimension_numbers = #tpu.dot_dimension_numbers<[1], [0], [0], [1], [0, 0, 1, 1], [], []>} : vector<8x32xbf16>, vector<32x128xbf16>, vector<8x128xf32> -> vector<8x128xf32>
    %c0_3 = arith.constant 0 : index
    %c0_4 = arith.constant 0 : index
    %3 = vector.load %arg2[%c0_3, %c0_4] : memref<8x32xbf16, #tpu.memory_space<vmem>>, vector<8x32xbf16>
    %c0_5 = arith.constant 0 : index
    %c0_6 = arith.constant 0 : index
    %4 = vector.load %arg4[%c0_5, %c0_6] : memref<32x128xbf16, #tpu.memory_space<vmem>>, vector<32x128xbf16>
    %cst_7 = arith.constant dense<0.000000e+00> : vector<8x128xf32>
    %5 = tpu.matmul %3, %4, %cst_7 {dimension_numbers = #tpu.dot_dimension_numbers<[1], [0], [0], [1], [0, 0, 1, 1], [], []>} : vector<8x32xbf16>, vector<32x128xbf16>, vector<8x128xf32> -> vector<8x128xf32>
    %6 = arith.addf %2, %5 : vector<8x128xf32>
    %c0_8 = arith.constant 0 : index
    %c0_9 = arith.constant 0 : index
    %7 = vector.load %arg5[%c0_8, %c0_9] : memref<1x128xf32, #tpu.memory_space<vmem>>, vector<1x128xf32>
    %8 = vector.broadcast %7 : vector<1x128xf32> to vector<8x128xf32>
    %9 = arith.addf %6, %8 : vector<8x128xf32>
    %cst_10 = arith.constant 0.000000e+00 : f32
    %10 = vector.broadcast %cst_10 : f32 to vector<8x128xf32>
    %11 = arith.maximumf %9, %10 : vector<8x128xf32>
    %c0_11 = arith.constant 0 : index
    %c0_12 = arith.constant 0 : index
    %12 = vector.load %arg6[%c0_11, %c0_12] : memref<8x128xf32, #tpu.memory_space<vmem>>, vector<8x128xf32>
    tpu.vector_store %arg6[%c0_11, %c0_12], %11 {strides = array<i32>} : memref<8x128xf32, #tpu.memory_space<vmem>>, vector<8x128xf32>,
    return
  }
  func.func @transform_0(%arg0: i32) -> (i32, i32) {
    %c0_i32 = arith.constant 0 : i32
    %c0_i32_0 = arith.constant 0 : i32
    return %arg0, %c0_i32 : i32, i32
  }
  func.func @transform_1(%arg0: i32) -> (i32, i32) {
    %c0_i32 = arith.constant 0 : i32
    %c0_i32_0 = arith.constant 0 : i32
    return %arg0, %c0_i32 : i32, i32
  }
  func.func @transform_2(%arg0: i32) -> (i32, i32) {
    %c0_i32 = arith.constant 0 : i32
    %c0_i32_0 = arith.constant 0 : i32
    %c0_i32_1 = arith.constant 0 : i32
    return %c0_i32, %c0_i32_0 : i32, i32
  }
  func.func @transform_3(%arg0: i32) -> (i32, i32) {
    %c0_i32 = arith.constant 0 : i32
    %c0_i32_0 = arith.constant 0 : i32
    %c0_i32_1 = arith.constant 0 : i32
    return %c0_i32, %c0_i32_0 : i32, i32
  }
  func.func @transform_4(%arg0: i32) -> (i32, i32) {
    %c0_i32 = arith.constant 0 : i32
    %c0_i32_0 = arith.constant 0 : i32
    %c0_i32_1 = arith.constant 0 : i32
    return %c0_i32, %c0_i32_0 : i32, i32
  }
  func.func @transform_5(%arg0: i32) -> (i32, i32) {
    %c0_i32 = arith.constant 0 : i32
    %c0_i32_0 = arith.constant 0 : i32
    return %arg0, %c0_i32 : i32, i32
  }
}

</mosaic_0001>

<bundles_post_ra>
// kernel: encoder_forward.1
= control target key start
LH: loop header
LB: loop body
LE: loop exit
PB: predicated region body
PF: predicated region fallthrough
CT: control target
= control target key end

     0   :  { %v225_v1 = vmov 0.0   ;;  %vm226_vm0 = vmmov 0   ;;  %s282_s0 = inlined_call_operand.vmem [shape: bf16[8,32], index: 0, kind: input, shape index: {}]   ;;  %s283_s1 = inlined_call_operand.vmem [shape: bf16[8,32], index: 1, kind: input, shape index: {}]   ;;  %s284_s2 = inlined_call_operand.vmem [shape: bf16[32,128], index: 2, kind: input, shape index: {}]   ;;  %s285_s3 = inlined_call_operand.vmem [shape: bf16[32,128], index: 3, kind: input, shape index: {}]   ;;  %s286_s4 = inlined_call_operand.vmem [shape: f32[1,128], index: 4, kind: input, shape index: {}]   ;;  %s287_s5 = inlined_call_operand.hbm [shape: f32[8,128], index: 5, kind: output, shape index: {}]  }
   0x1   :  { %v199_v0 = vld [vmem:[%s285_s3 + $0x8] sm:$0xff]   ;;  %180 = vmatprep.subr.bf16.mxu0 %v225_v1  ;;  %188 = vmatprep.subr.bf16.mxu1 %v225_v1  ;;  %v201_v3 = vld [vmem:[%s285_s3] sm:$0xff]  }
   0x2   :  { %v200_v2 = vld [vmem:[%s284_s2 + $0x8] sm:$0xff]   ;;  %181 = vmatpush3.bf16.msra.mxu0 %v199_v0  ;;  %184 = vmatprep.mubr.msk.bf16.mxu0 %vm226_vm0, %v225_v1  ;;  %v202_v4 = vld [vmem:[%s284_s2] sm:$0xff]  }
   0x3   :  { %189 = vmatpush3.bf16.msra.mxu1 %v200_v2  ;;  %182 = vmatprep.subr.bf16.mxu0 %v225_v1 }
   0x4   :  { %190 = vmatprep.subr.bf16.mxu1 %v225_v1  ;;  %192 = vmatprep.mubr.msk.bf16.mxu1 %vm226_vm0, %v225_v1 }
   0x5   :  { %10 = vsyncpa [#allocation3], 0  ;;  %v27_v5 = vld [vmem:[%s283_s1] sm:$0xf]  ;;  %vm44_vm1 = vcmask 261120   ;;  %s227_s30 = smov [#allocation2]  }
   0x6   :  { %183 = vmatpush3.bf16.msra.mxu0 %v201_v3  ;;  %v22_v6 = vld [vmem:[%s282_s0] sm:$0xf]  ;;  %s159_s6 = sshll.u32 %s227_s30, 4  ;;  %s160_s6 = int_to_ptr.vmem [resolvable:$true] %s159_s6 }
   0x7   :  { %191 = vmatpush3.bf16.msra.mxu1 %v202_v4  ;;  %v173_v9 = vld [vmem:[%s286_s4] ss:$0 sm:$0xff]  ;;  %s203_s0 = scalar_lea.vmem %s160_s6, 128  ;;  %p208_p1 = scmp.lt.s32.totalorder %s160_s6, %s160_s6 }
   0x8   :  { %p204_p0 = scmp.ne.s32.totalorder %s160_s6, %s203_s0  ;;  %p209_p2 = scmp.lt.s32.totalorder %s203_s0, %s203_s0 }
   0x9   :  { %185 = vmatmul.mubr.msk.bf16.vlgmr.msra.gmra.mxu0 %vm44_vm1, %v27_v5 }
   0xa   :  { %193 = vmatmul.mubr.msk.bf16.vlgmr.msra.gmra.mxu1 %vm44_vm1, %v22_v6  ;;  %p210_p3 = por %p209_p2, %p208_p1 }
   0xc   :  { %p211_p4 = pnand %p210_p3, %p204_p0 }
  0xc9   :  { %v82_v7 = vpop.f32.mrf.mxu0 }
  0xca   :  { %v137_v8 = vpop.f32.mrf.mxu1 }
  0xcb   :  { %v138_v10 = vadd.f32 %v137_v8, %v82_v7  ;;  %v186_v11 = vpop.f32.mrf.mxu0 }
  0xcc   :  { %v194_v12 = vpop.f32.mrf.mxu1 }
  0xcd   :  { %v150_v13 = vadd.f32 %v173_v9, %v138_v10  ;;  %v85_v14 = vpop.f32.mrf.mxu0 }
  0xce   :  { %v140_v15 = vpop.f32.mrf.mxu1 }
  0xcf   :  { %v187_v16 = vpop.f32.mrf.mxu0  ;;  %v151_v17 = vmax.f32 %v150_v13, 0.0 }
  0xd0   :  { %v195_v18 = vpop.f32.mrf.mxu1 }
  0xd1   :  { %152 = vst [vmem:[#allocation2] sm:$0xff] %v151_v17 }
  0xd2   :  { %214 = shalt.err (!%p211_p4)
}
  0xd3   :  { %162 = dma.vmem_to_hbm [thread:$0]  %s160_s6, 128, %s287_s5, [#allocation3]  }
  0xd4   :  { %223 = dma.done.wait [#allocation3], 128  }
  0xd5   :  { %224 = vsyncadd [#allocation3], 4294967168 }
  0xd6   :  { %166 = vsyncpa [#allocation3], 1 }

</bundles_post_ra>
